<compile_context>
chip_gen: v5e
topology: v5e:2x2
jax: 0.10.0
libtpu: 0.0.40
codegen_flags: <defaults>
</compile_context>

<pallas_src>
import functools

import jax
import jax.numpy as jnp
from jax import lax
from jax.experimental import pallas as pl
from jax.experimental.pallas import tpu as pltpu


def _round_up(x, m):
    return ((x + m - 1) // m) * m


def _patch_embed_kernel(p_ref, w_ref, b_ref, o_ref):
    # p_ref: (tm, K_pad) bf16 patches, w_ref: (K_pad, tn) bf16 weight,
    # b_ref: (1, tn) f32 bias, o_ref: (tm, tn) output tile.
    acc = jnp.dot(p_ref[...], w_ref[...], preferred_element_type=jnp.float32)
    o_ref[...] = (acc + b_ref[...]).astype(o_ref.dtype)   # bias/epilogue in f32


def _pick_tile_m(M, K_pad, tn, out_bytes, budget_bytes=20 * 1024 * 1024):
    """Largest M tile whose double-buffered VMEM footprint fits the budget."""
    for tm in (1024, 512, 256, 128, 64, 32, 16):
        need = (2 * (tm * K_pad * 2)        # patches, bf16, double-buffered
                + 2 * (K_pad * tn * 2)      # weight, bf16
                + 2 * (tn * 4)              # bias, f32
                + 2 * (tm * tn * out_bytes))  # output tile
        if need <= budget_bytes:
            break
    # Never pick a tile larger than the (16-aligned) problem; keep multiple of 16
    # so bf16 (16,128) sublane packing stays aligned.
    return min(tm, _round_up(M, 16))


def patch_embed_forward(x, weight, bias, patch_size):
    """x: [N, C, H, W], weight: [E, C, p, p], bias: [E] -> [N, num_patches, E]."""
    N, C, H, W = x.shape
    E = weight.shape[0]
    p = patch_size
    Hp, Wp = H // p, W // p
    T = Hp * Wp
    K = C * p * p
    M = N * T

    # Lane-dense / MXU-aligned padded dims.
    K_pad = _round_up(K, 128)
    E_pad = _round_up(E, 128)
    tn = 256 if E_pad % 256 == 0 else 128   # 128 also matches v5e's 4x128^2 MXU
    out_dtype = x.dtype
    out_bytes = jnp.dtype(out_dtype).itemsize
    tm = _pick_tile_m(M, K_pad, tn, out_bytes)
    M_pad = _round_up(M, tm)

    # --- glue (pure JAX): patch extraction in (C, ph, pw) order, done in bf16 ---
    patches = (
        x.astype(jnp.bfloat16)
        .reshape(N, C, Hp, p, Wp, p)
        .transpose(0, 2, 4, 1, 3, 5)        # [N, Hp, Wp, C, p, p]
        .reshape(M, K)
    )
    if (M_pad != M) or (K_pad != K):
        patches = jnp.pad(patches, ((0, M_pad - M), (0, K_pad - K)))

    w2 = weight.reshape(E, K).T.astype(jnp.bfloat16)        # [K, E]
    if (K_pad != K) or (E_pad != E):
        w2 = jnp.pad(w2, ((0, K_pad - K), (0, E_pad - E)))
    b2 = bias.reshape(1, E).astype(jnp.float32)
    if E_pad != E:
        b2 = jnp.pad(b2, ((0, 0), (0, E_pad - E)))

    grid = (M_pad // tm, E_pad // tn)
    cost = pl.CostEstimate(
        flops=2 * M * K * E,
        transcendentals=0,
        bytes_accessed=M_pad * K_pad * 2 + K_pad * E_pad * 2
        + M_pad * E_pad * out_bytes + E_pad * 4,
    )

    out = pl.pallas_call(
        _patch_embed_kernel,
        out_shape=jax.ShapeDtypeStruct((M_pad, E_pad), out_dtype),
        grid=grid,
        in_specs=[
            pl.BlockSpec((tm, K_pad), lambda i, j: (i, 0)),
            pl.BlockSpec((K_pad, tn), lambda i, j: (0, j)),
            pl.BlockSpec((1, tn), lambda i, j: (0, j)),
        ],
        out_specs=pl.BlockSpec((tm, tn), lambda i, j: (i, j)),
        compiler_params=pltpu.CompilerParams(
            dimension_semantics=("parallel", "parallel"),
            vmem_limit_bytes=32 * 1024 * 1024,
        ),
        cost_estimate=cost,
    )(patches, w2, b2)

    return out[:M, :E].reshape(N, T, E)


_patch_embed_jit = jax.jit(patch_embed_forward, static_argnums=3)


def _reference_forward(x, weight, bias, patch_size):
    # Pure-JAX f32 reference: strided conv (NCHW, OIHW) then flatten(2).transpose(1,2).
    y = lax.conv_general_dilated(
        x, weight,
        window_strides=(patch_size, patch_size),
        padding="VALID",
        dimension_numbers=("NCHW", "OIHW", "NCHW"),
    ) + bias.reshape(1, -1, 1, 1)
    N, E, Hp, Wp = y.shape
    return y.reshape(N, E, Hp * Wp).transpose(0, 2, 1)


if __name__ == "__main__":
    # Small shapes consistent with the module: N=2, C=4, H=W=16, patch=8, E=32.
    N, C, H, W = 2, 4, 16, 16
    patch_size = 8
    n_embed = 32

    key = jax.random.PRNGKey(0)
    kx, kw, kb = jax.random.split(key, 3)
    x = jax.random.normal(kx, (N, C, H, W), dtype=jnp.float32)
    # Deterministic synthetic parameters (Conv2d weight [E, C, p, p], bias [E]).
    fan_in = C * patch_size * patch_size
    bound = 1.0 / (fan_in ** 0.5)
    weight = jax.random.uniform(
        kw, (n_embed, C, patch_size, patch_size), jnp.float32, -bound, bound)
    bias = jax.random.uniform(kb, (n_embed,), jnp.float32, -bound, bound)

    out = _patch_embed_jit(x, weight, bias, patch_size)
    out = jax.block_until_ready(out)

    ref = _reference_forward(x, weight, bias, patch_size)
    assert out.shape == (N, (H // patch_size) * (W // patch_size), n_embed)
    # bf16 matmul inputs with f32 accumulation -> modest tolerance vs f32 conv.
    assert jnp.allclose(out, ref, atol=3e-2, rtol=3e-2), float(
        jnp.max(jnp.abs(out - ref)))

    print("KERNEL_OK")
</pallas_src>

<mosaic_0001>
module attributes {stable_mosaic.version = 11 : i64} {
  func.func @_patch_embed_kernel(%arg0: i32, %arg1: i32, %arg2: memref<16x256xbf16, #tpu.memory_space<vmem>>, %arg3: memref<256x128xbf16, #tpu.memory_space<vmem>>, %arg4: memref<1x128xf32, #tpu.memory_space<vmem>>, %arg5: memref<16x128xf32, #tpu.memory_space<vmem>>) attributes {dimension_semantics = [#tpu.dimension_semantics<parallel>, #tpu.dimension_semantics<parallel>], iteration_bounds = array<i64: 1, 1>, scalar_prefetch = 0 : i64, scratch_operands = 0 : i64, tpu.core_type = #tpu.core_type<tc>, window_params = [{transform_indices = @transform_0, window_bounds = array<i64: 16, 256>}, {transform_indices = @transform_1, window_bounds = array<i64: 256, 128>}, {transform_indices = @transform_2, window_bounds = array<i64: 1, 128>}, {transform_indices = @transform_3, window_bounds = array<i64: 16, 128>}]} {
    %c0 = arith.constant 0 : index
    %c0_0 = arith.constant 0 : index
    %0 = vector.load %arg2[%c0, %c0_0] : memref<16x256xbf16, #tpu.memory_space<vmem>>, vector<16x256xbf16>
    %c0_1 = arith.constant 0 : index
    %c0_2 = arith.constant 0 : index
    %1 = vector.load %arg3[%c0_1, %c0_2] : memref<256x128xbf16, #tpu.memory_space<vmem>>, vector<256x128xbf16>
    %cst = arith.constant dense<0.000000e+00> : vector<16x128xf32>
    %2 = tpu.matmul %0, %1, %cst {dimension_numbers = #tpu.dot_dimension_numbers<[1], [0], [0], [1], [0, 0, 1, 1], [], []>} : vector<16x256xbf16>, vector<256x128xbf16>, vector<16x128xf32> -> vector<16x128xf32>
    %c0_3 = arith.constant 0 : index
    %c0_4 = arith.constant 0 : index
    %3 = vector.load %arg4[%c0_3, %c0_4] : memref<1x128xf32, #tpu.memory_space<vmem>>, vector<1x128xf32>
    %4 = vector.broadcast %3 : vector<1x128xf32> to vector<16x128xf32>
    %5 = arith.addf %2, %4 : vector<16x128xf32>
    %c0_5 = arith.constant 0 : index
    %c0_6 = arith.constant 0 : index
    %6 = vector.load %arg5[%c0_5, %c0_6] : memref<16x128xf32, #tpu.memory_space<vmem>>, vector<16x128xf32>
    tpu.vector_store %arg5[%c0_5, %c0_6], %5 {strides = array<i32>} : memref<16x128xf32, #tpu.memory_space<vmem>>, vector<16x128xf32>,
    return
  }
  func.func @transform_0(%arg0: i32, %arg1: i32) -> (i32, i32) {
    %c0_i32 = arith.constant 0 : i32
    %c0_i32_0 = arith.constant 0 : i32
    return %arg0, %c0_i32 : i32, i32
  }
  func.func @transform_1(%arg0: i32, %arg1: i32) -> (i32, i32) {
    %c0_i32 = arith.constant 0 : i32
    %c0_i32_0 = arith.constant 0 : i32
    return %c0_i32, %arg1 : i32, i32
  }
  func.func @transform_2(%arg0: i32, %arg1: i32) -> (i32, i32) {
    %c0_i32 = arith.constant 0 : i32
    %c0_i32_0 = arith.constant 0 : i32
    return %c0_i32, %arg1 : i32, i32
  }
  func.func @transform_3(%arg0: i32, %arg1: i32) -> (i32, i32) {
    %c0_i32 = arith.constant 0 : i32
    return %arg0, %arg1 : i32, i32
  }
}

</mosaic_0001>

<bundles_post_ra>
// kernel: patch_embed_forward.1
= control target key start
LH: loop header
LB: loop body
LE: loop exit
PB: predicated region body
PF: predicated region fallthrough
CT: control target
= control target key end

     0   :  { %s372_s1 = inlined_call_operand.vmem [shape: bf16[256,128], index: 1, kind: input, shape index: {}]   ;;  %s373_s2 = inlined_call_operand.vmem [shape: f32[1,128], index: 2, kind: input, shape index: {}]   ;;  %s374_s0 = inlined_call_operand.vmem [shape: bf16[16,256], index: 0, kind: input, shape index: {}]   ;;  %s375_s3 = inlined_call_operand.vmem [shape: f32[16,128], index: 3, kind: output, shape index: {}]  }
   0x1   :  { %v273_v0 = vld [vmem:[%s372_s1 + $0x38] sm:$0xff]  ;;  %v272_v2 = vld [vmem:[%s372_s1 + $0x30] sm:$0xff]  ;;  %v271_v4 = vld [vmem:[%s372_s1 + $0x28] sm:$0xff] }
   0x2   :  { %v281_v1 = vld [vmem:[%s372_s1 + $0x78] sm:$0xff]  ;;  %158 = vmatpush.bf16.msra.mxu0 %v273_v0  ;;  %v280_v3 = vld [vmem:[%s372_s1 + $0x70] sm:$0xff]  ;;  %v279_v5 = vld [vmem:[%s372_s1 + $0x68] sm:$0xff] }
   0x3   :  { %172 = vmatpush.bf16.msra.mxu1 %v281_v1  ;;  %v270_v6 = vld [vmem:[%s372_s1 + $0x20] sm:$0xff]  ;;  %v269_v8 = vld [vmem:[%s372_s1 + $0x18] sm:$0xff]  ;;  %v268_v10 = vld [vmem:[%s372_s1 + $0x10] sm:$0xff] }
   0x4   :  { %v278_v7 = vld [vmem:[%s372_s1 + $0x60] sm:$0xff]  ;;  %v277_v9 = vld [vmem:[%s372_s1 + $0x58] sm:$0xff]  ;;  %v276_v11 = vld [vmem:[%s372_s1 + $0x50] sm:$0xff] }
   0x5   :  { %v267_v12 = vld [vmem:[%s372_s1 + $0x8] sm:$0xff]  ;;  %v266_v14 = vld [vmem:[%s372_s1] sm:$0xff] }
   0x6   :  { %159 = vmatpush.bf16.msra.mxu0 %v272_v2  ;;  %v275_v13 = vld [vmem:[%s372_s1 + $0x48] sm:$0xff]  ;;  %v274_v15 = vld [vmem:[%s372_s1 + $0x40] sm:$0xff] }
   0x7   :  { %173 = vmatpush.bf16.msra.mxu1 %v280_v3  ;;  %v194_v16 = vld [vmem:[%s374_s0] sm:$0xf]  ;;  %v265_v17 = vld [vmem:[%s374_s0 + $0x4] sm:$0xf0]  ;;  %v264_v18 = vld [vmem:[%s374_s0 + $0x4] sm:$0xf] }
   0x8   :  { %v196_v19 = vld [vmem:[%s374_s0 + $0x8] sm:$0xf0]  ;;  %v195_v20 = vor.u32 %v265_v17, %v194_v16  ;;  %v282_v22 = vld [vmem:[%s373_s2] ss:$0 sm:$0xff] }
   0x9   :  { %v199_v21 = vor.u32 %v264_v18, %v196_v19 }
   0xa   :  { %160 = vmatpush.bf16.msra.mxu0 %v271_v4 }
   0xb   :  { %174 = vmatpush.bf16.msra.mxu1 %v279_v5 }
   0xe   :  { %161 = vmatpush.bf16.msra.mxu0 %v270_v6 }
   0xf   :  { %175 = vmatpush.bf16.msra.mxu1 %v278_v7 }
  0x12   :  { %162 = vmatpush.bf16.msra.mxu0 %v269_v8 }
  0x13   :  { %176 = vmatpush.bf16.msra.mxu1 %v277_v9 }
  0x16   :  { %163 = vmatpush.bf16.msra.mxu0 %v268_v10 }
  0x17   :  { %177 = vmatpush.bf16.msra.mxu1 %v276_v11 }
  0x1a   :  { %164 = vmatpush.bf16.msra.mxu0 %v267_v12 }
  0x1b   :  { %178 = vmatpush.bf16.msra.mxu1 %v275_v13 }
  0x1e   :  { %165 = vmatpush.bf16.msra.mxu0 %v266_v14 }
  0x1f   :  { %179 = vmatpush.bf16.msra.mxu1 %v274_v15 }
  0x21   :  { %166 = vmatmul.bf16.vlgmr.msra.gmra.mxu0 %v195_v20 }
  0x22   :  { %180 = vmatmul.bf16.vlgmr.msra.gmra.mxu1 %v199_v21 }
  0x9e   :  { %v167_v23 = vpop.f32.mrf.mxu0 }
  0x9f   :  { %v181_v24 = vpop.f32.mrf.mxu1  ;;  %v168_v25 = vadd.f32 %v282_v22, %v167_v23 }
  0xa1   :  { %v182_v26 = vadd.f32 %v181_v24, %v168_v25 }
  0xa3   :  { %186 = vst [vmem:[%s375_s3] sm:$0xff] %v182_v26 }
  0xa6   :  { %v169_v27 = vpop.f32.mrf.mxu0 }
  0xa7   :  { %v170_v28 = vadd.f32 %v282_v22, %v169_v27  ;;  %v183_v29 = vpop.f32.mrf.mxu1 }
  0xa9   :  { %v184_v30 = vadd.f32 %v183_v29, %v170_v28 }
  0xab   :  { %187 = vst [vmem:[%s375_s3 + $0x8] sm:$0xff] %v184_v30 }

</bundles_post_ra>
